<compile_context>
chip_gen: v7x
topology: tpu7x:2x2x1
jax: 0.10.0
libtpu: 0.0.40
codegen_flags: <defaults>
</compile_context>

<pallas_src>
import functools
import math

import jax
import jax.numpy as jnp
from jax import lax
from jax.experimental import pallas as pl
from jax.experimental.pallas import tpu as pltpu


# ---------------------------------------------------------------------------
# Core per-tile attention math (shared by both block layouts).
# ---------------------------------------------------------------------------
def _attn_tile(x3, wq_t, wk_t, bq, bk):
    """Attention on one (TB, S, D) tile.  Weights are (D, QK), scale pre-folded.

    Returns a (TB, S, D) float32 tile.
    """
    tb, s, d = x3.shape
    qk = wq_t.shape[1]

    # One large 2-D MXU matmul per projection (leading-dim-merge reshape only,
    # minor dim unchanged -> no relayout).  f32 accumulation on the MXU.
    x2 = x3.reshape(tb * s, d)
    q = jnp.dot(x2, wq_t, preferred_element_type=jnp.float32) + bq
    k = jnp.dot(x2, wk_t, preferred_element_type=jnp.float32) + bk
    q = q.reshape(tb, s, qk)
    k = k.reshape(tb, s, qk)

    # Scores (scale already folded into Wq/bq) + causal mask built in-kernel.
    scores = jnp.einsum("bqe,bke->bqk", q, k, preferred_element_type=jnp.float32)
    q_pos = lax.broadcasted_iota(jnp.int32, (s, s), 0)
    k_pos = lax.broadcasted_iota(jnp.int32, (s, s), 1)
    scores = jnp.where((q_pos >= k_pos)[None], scores, jnp.float32(-10000.0))

    # Numerically stable softmax in f32 (exact division to keep torch parity).
    m = jnp.max(scores, axis=-1, keepdims=True)
    e = jnp.exp(scores - m)
    probs = e / jnp.sum(e, axis=-1, keepdims=True)

    # Identity OV: out = P @ x on the MXU (probs in x dtype for the bf16 path).
    return jnp.einsum("bqk,bkd->bqd", probs.astype(x3.dtype), x3,
                      preferred_element_type=jnp.float32)


# ---------------------------------------------------------------------------
# Kernels (lane-dense flat blocks, plus a conservative 3-D fallback).
# ---------------------------------------------------------------------------
def _kernel_flat(x_ref, wq_ref, wk_ref, bq_ref, bk_ref, o_ref, *, seq):
    # x_ref/o_ref: (TB, S*D) lane-dense blocks; weights (D, QK); biases (1, QK).
    tb, sd = x_ref.shape
    d = sd // seq
    x3 = x_ref[...].reshape(tb, seq, d)          # single in-kernel relayout
    out = _attn_tile(x3, wq_ref[...], wk_ref[...],
                     bq_ref[...].astype(jnp.float32),
                     bk_ref[...].astype(jnp.float32))
    o_ref[...] = out.reshape(tb, sd).astype(o_ref.dtype)


def _kernel_3d(x_ref, wq_ref, wk_ref, bq_ref, bk_ref, o_ref):
    # x_ref/o_ref: (TB, S, D) blocks (proven layout; masked stores but always lowers).
    out = _attn_tile(x_ref[...], wq_ref[...], wk_ref[...],
                     bq_ref[...].astype(jnp.float32),
                     bk_ref[...].astype(jnp.float32))
    o_ref[...] = out.astype(o_ref.dtype)


# ---------------------------------------------------------------------------
# Tiling policy.
# ---------------------------------------------------------------------------
def _vmem_params():
    """(per-step VMEM budget, min grid steps for megacore, vmem_limit_bytes)."""
    kind = ""
    try:
        kind = jax.devices()[0].device_kind.lower()
    except Exception:
        pass
    if "v5" in kind or "v6" in kind:
        return 16 << 20, 1, 64 << 20      # 128 MiB physical VMEM, 1 TensorCore
    if "v7" in kind:
        return 8 << 20, 2, 40 << 20       # 64 MiB physical / 32 MiB scoped, 2 TCs
    return 8 << 20, 2, 32 << 20           # unknown generation: be conservative


def _pick_batch_tile(batch, per_row_bytes, budget_bytes, min_grid_steps):
    """Choose (TB, padded_batch).

    The flat blocks are (TB, S*D); the second-minor block dim must be a multiple
    of 8 or span the whole (padded) batch, so we either take the whole batch in
    one resident step or use a multiple-of-8 tile and pad the batch up to it.
    """
    cap = max(1, int(budget_bytes // max(per_row_bytes, 1)))
    want_steps = max(1, int(min_grid_steps))
    if batch <= cap and (want_steps == 1 or batch < 16):
        return batch, batch               # whole batch in one step, no padding
    tb = min(cap, -(-batch // want_steps))
    tb = max(8, (tb // 8) * 8)            # sublane-align the tile
    # Shrink (in multiples of 8) if padding waste would exceed ~25% of the batch.
    while tb > 8 and (-(-batch // tb) * tb - batch) * 4 > batch:
        tb -= 8
    padded = -(-batch // tb) * tb
    return tb, padded


# ---------------------------------------------------------------------------
# pallas_call builder + public wrapper.
# ---------------------------------------------------------------------------
def _build_call(b_pad, seq, d, qk, tb, dtype, vmem_limit, flat):
    if flat:
        kern = functools.partial(_kernel_flat, seq=seq)
        x_spec = pl.BlockSpec((tb, seq * d), lambda i: (i, 0))
        o_spec = pl.BlockSpec((tb, seq * d), lambda i: (i, 0))
        out_shape = jax.ShapeDtypeStruct((b_pad, seq * d), dtype)
    else:
        kern = _kernel_3d
        x_spec = pl.BlockSpec((tb, seq, d), lambda i: (i, 0, 0))
        o_spec = pl.BlockSpec((tb, seq, d), lambda i: (i, 0, 0))
        out_shape = jax.ShapeDtypeStruct((b_pad, seq, d), dtype)

    return pl.pallas_call(
        kern,
        out_shape=out_shape,
        grid_spec=pltpu.PrefetchScalarGridSpec(
            num_scalar_prefetch=0,
            grid=(b_pad // tb,),
            in_specs=[
                x_spec,                                      # batch tile of x
                pl.BlockSpec((d, qk), lambda i: (0, 0)),     # Wq^T * scale (resident)
                pl.BlockSpec((d, qk), lambda i: (0, 0)),     # Wk^T (resident)
                pl.BlockSpec((1, qk), lambda i: (0, 0)),     # bq * scale
                pl.BlockSpec((1, qk), lambda i: (0, 0)),     # bk
            ],
            out_specs=o_spec,
        ),
        compiler_params=pltpu.CompilerParams(
            dimension_semantics=("parallel",),   # shard batch steps over v7x's 2 TCs
            vmem_limit_bytes=vmem_limit,
        ),
    )


def weighting_attn_forward(x, wq, bq, wk, bk):
    """x: (B, S, D); wq/wk: (qk_dim, D); bq/bk: (qk_dim,). Returns (B, S, D)."""
    B, S, D = x.shape
    QK = wq.shape[0]
    scale = 1.0 / math.sqrt(float(QK))

    # Host-side prep: pre-transpose weights to (D, QK) so the kernel does x @ W
    # directly, and fold the 1/sqrt(qk_dim) score scale into the Q projection.
    wq_t = (wq.T * scale).astype(x.dtype)
    wk_t = wk.T.astype(x.dtype)
    bq2 = (bq * scale).reshape(1, QK).astype(jnp.float32)
    bk2 = bk.reshape(1, QK).astype(jnp.float32)

    budget, min_steps, vmem_limit = _vmem_params()
    itemsize = x.dtype.itemsize
    # Per batch row: double-buffered x/out blocks (native dtype) + f32 temporaries
    # (q/k: 2*S*QK, scores/exp/probs: ~3*S*S, f32 out/x slack: 2*S*D).
    per_row = 4 * S * D * itemsize + 4 * (2 * S * QK + 3 * S * S + 2 * S * D)
    TB, B_pad = _pick_batch_tile(B, per_row, budget, min_steps)
    # TODO(synk): for long sequences (3*S^2*4 bytes/row beyond the budget even at
    # TB=8) switch to a key-tiled flash/online-softmax variant instead of relying
    # on the raised vmem_limit.

    x_flat = x.reshape(B, S * D)
    if B_pad != B:
        x_flat = jnp.pad(x_flat, ((0, B_pad - B), (0, 0)))

    try:
        # Primary: lane-dense (TB, S*D) blocks -> unmasked stores, dense DMA.
        out = _build_call(B_pad, S, D, QK, TB, x.dtype, vmem_limit, flat=True)(
            x_flat, wq_t, wk_t, bq2, bk2)
        out = jax.block_until_ready(out).reshape(B_pad, S, D)
    except Exception:
        # Fallback for Mosaic versions that cannot lower the in-kernel minor-dim
        # relayout: identical math on (TB, S, D) blocks (proven to compile).
        x3 = x_flat.reshape(B_pad, S, D)
        out = _build_call(B_pad, S, D, QK, TB, x.dtype, vmem_limit, flat=False)(
            x3, wq_t, wk_t, bq2, bk2)
    return out[:B]


# ---------------------------------------------------------------------------
# Pure-JAX reference (mirror of the PyTorch forward).
# ---------------------------------------------------------------------------
def _reference(x, wq, bq, wk, bk):
    qk_dim = wq.shape[0]
    q = jnp.einsum("bsd,kd->bsk", x, wq) + bq[None, None, :]
    k = jnp.einsum("bsd,kd->bsk", x, wk) + bk[None, None, :]
    S = x.shape[1]
    mask = jnp.arange(S)[:, None] >= jnp.arange(S)[None, :]
    scores = jnp.einsum("bqd,bkd->bqk", q, k) / jnp.sqrt(jnp.float32(qk_dim))
    scores = jnp.where(mask[None], scores, jnp.float32(-10000.0))
    probs = jax.nn.softmax(scores, axis=-1)
    return jnp.einsum("bqk,bkv->bqv", probs, x)


if __name__ == "__main__":
    # Small shapes consistent with the module: batch=2, seq=8, n_embd=32, qk_dim=16.
    B, S, D, QK = 2, 8, 32, 16
    key = jax.random.PRNGKey(0)
    kx, kwq, kbq, kwk, kbk = jax.random.split(key, 5)

    x = jax.random.normal(kx, (B, S, D), dtype=jnp.float32)
    # nn.Linear(n_embd, qk_dim) default init: uniform(-1/sqrt(n_embd), 1/sqrt(n_embd)).
    bound = 1.0 / math.sqrt(D)
    wq = jax.random.uniform(kwq, (QK, D), jnp.float32, -bound, bound)
    bq = jax.random.uniform(kbq, (QK,), jnp.float32, -bound, bound)
    wk = jax.random.uniform(kwk, (QK, D), jnp.float32, -bound, bound)
    bk = jax.random.uniform(kbk, (QK,), jnp.float32, -bound, bound)

    out = weighting_attn_forward(x, wq, bq, wk, bk)
    out = jax.block_until_ready(out)

    ref = _reference(x, wq, bq, wk, bk)
    assert out.shape == (B, S, D)
    assert jnp.allclose(out, ref, atol=1e-5, rtol=1e-5), "mismatch vs reference"

    print("KERNEL_OK")
</pallas_src>

<mosaic_0001>
module attributes {stable_mosaic.version = 11 : i64} {
  func.func @_kernel_flat(%arg0: i32, %arg1: memref<2x256xf32, #tpu.memory_space<vmem>>, %arg2: memref<32x16xf32, #tpu.memory_space<vmem>>, %arg3: memref<32x16xf32, #tpu.memory_space<vmem>>, %arg4: memref<1x16xf32, #tpu.memory_space<vmem>>, %arg5: memref<1x16xf32, #tpu.memory_space<vmem>>, %arg6: memref<2x256xf32, #tpu.memory_space<vmem>>) attributes {dimension_semantics = [#tpu.dimension_semantics<parallel>], iteration_bounds = array<i64: 1>, scalar_prefetch = 0 : i64, scratch_operands = 0 : i64, tpu.core_type = #tpu.core_type<tc>, window_params = [{transform_indices = @transform_0, window_bounds = array<i64: 2, 256>}, {pipeline_mode = #tpu.pipeline_mode<synchronous>, transform_indices = @transform_1, window_bounds = array<i64: 32, 16>}, {pipeline_mode = #tpu.pipeline_mode<synchronous>, transform_indices = @transform_2, window_bounds = array<i64: 32, 16>}, {pipeline_mode = #tpu.pipeline_mode<synchronous>, transform_indices = @transform_3, window_bounds = array<i64: 1, 16>}, {pipeline_mode = #tpu.pipeline_mode<synchronous>, transform_indices = @transform_4, window_bounds = array<i64: 1, 16>}, {transform_indices = @transform_5, window_bounds = array<i64: 2, 256>}]} {
    %c0 = arith.constant 0 : index
    %c0_0 = arith.constant 0 : index
    %0 = vector.load %arg1[%c0, %c0_0] : memref<2x256xf32, #tpu.memory_space<vmem>>, vector<2x256xf32>
    %1 = vector.shape_cast %0 : vector<2x256xf32> to vector<2x8x32xf32>
    %c0_1 = arith.constant 0 : index
    %c0_2 = arith.constant 0 : index
    %2 = vector.load %arg2[%c0_1, %c0_2] : memref<32x16xf32, #tpu.memory_space<vmem>>, vector<32x16xf32>
    %c0_3 = arith.constant 0 : index
    %c0_4 = arith.constant 0 : index
    %3 = vector.load %arg3[%c0_3, %c0_4] : memref<32x16xf32, #tpu.memory_space<vmem>>, vector<32x16xf32>
    %c0_5 = arith.constant 0 : index
    %c0_6 = arith.constant 0 : index
    %4 = vector.load %arg4[%c0_5, %c0_6] : memref<1x16xf32, #tpu.memory_space<vmem>>, vector<1x16xf32>
    %c0_7 = arith.constant 0 : index
    %c0_8 = arith.constant 0 : index
    %5 = vector.load %arg5[%c0_7, %c0_8] : memref<1x16xf32, #tpu.memory_space<vmem>>, vector<1x16xf32>
    %6 = vector.shape_cast %1 : vector<2x8x32xf32> to vector<16x32xf32>
    %cst = arith.constant dense<0.000000e+00> : vector<16x16xf32>
    %7 = tpu.matmul %6, %2, %cst {dimension_numbers = #tpu.dot_dimension_numbers<[1], [0], [0], [1], [0, 0, 1, 1], [], []>} : vector<16x32xf32>, vector<32x16xf32>, vector<16x16xf32> -> vector<16x16xf32>
    %8 = vector.broadcast %4 : vector<1x16xf32> to vector<16x16xf32>
    %9 = arith.addf %7, %8 : vector<16x16xf32>
    %cst_9 = arith.constant dense<0.000000e+00> : vector<16x16xf32>
    %10 = tpu.matmul %6, %3, %cst_9 {dimension_numbers = #tpu.dot_dimension_numbers<[1], [0], [0], [1], [0, 0, 1, 1], [], []>} : vector<16x32xf32>, vector<32x16xf32>, vector<16x16xf32> -> vector<16x16xf32>
    %11 = vector.broadcast %5 : vector<1x16xf32> to vector<16x16xf32>
    %12 = arith.addf %10, %11 : vector<16x16xf32>
    %13 = vector.shape_cast %9 : vector<16x16xf32> to vector<2x8x16xf32>
    %14 = vector.shape_cast %12 : vector<16x16xf32> to vector<2x8x16xf32>
    "tpu.trace_start"() <{level = 10 : i32, message = "bqe,bke->bqk"}> : () -> ()
    %cst_10 = arith.constant dense<0.000000e+00> : vector<2x8x8xf32>
    %15 = tpu.matmul %13, %14, %cst_10 {dimension_numbers = #tpu.dot_dimension_numbers<[2], [2], [1], [1], [0, 0, 0, 1, 1, 1], [0], [0]>} : vector<2x8x16xf32>, vector<2x8x16xf32>, vector<2x8x8xf32> -> vector<2x8x8xf32>
    "tpu.trace_stop"() : () -> ()
    %16 = tpu.iota {dimensions = array<i32: 0>} : vector<8x8xi32>
    %17 = tpu.iota {dimensions = array<i32: 1>} : vector<8x8xi32>
    %18 = arith.cmpi sge, %16, %17 : vector<8x8xi32>
    %19 = vector.shape_cast %18 : vector<8x8xi1> to vector<1x8x8xi1>
    %cst_11 = arith.constant -1.000000e+04 : f32
    %20 = vector.shape_cast %19 : vector<1x8x8xi1> to vector<1x8x8xi1>
    %21 = vector.broadcast %20 : vector<1x8x8xi1> to vector<2x8x8xi1>
    %22 = vector.broadcast %cst_11 : f32 to vector<2x8x8xf32>
    %23 = arith.select %21, %15, %22 : vector<2x8x8xi1>, vector<2x8x8xf32>
    %cst_12 = arith.constant dense<0xFF800000> : vector<2x8xf32>
    %24 = vector.multi_reduction <maximumf>, %23, %cst_12 [2] : vector<2x8x8xf32> to vector<2x8xf32>
    %25 = vector.shape_cast %24 : vector<2x8xf32> to vector<2x8x1xf32>
    %26 = vector.broadcast %25 : vector<2x8x1xf32> to vector<2x8x8xf32>
    %27 = arith.subf %23, %26 : vector<2x8x8xf32>
    %28 = math.exp %27 : vector<2x8x8xf32>
    %cst_13 = arith.constant dense<0.000000e+00> : vector<2x8xf32>
    %29 = vector.multi_reduction <add>, %28, %cst_13 [2] : vector<2x8x8xf32> to vector<2x8xf32>
    %30 = vector.shape_cast %29 : vector<2x8xf32> to vector<2x8x1xf32>
    %31 = vector.broadcast %30 : vector<2x8x1xf32> to vector<2x8x8xf32>
    %32 = arith.divf %28, %31 : vector<2x8x8xf32>
    "tpu.trace_start"() <{level = 10 : i32, message = "bqk,bkd->bqd"}> : () -> ()
    %cst_14 = arith.constant dense<0.000000e+00> : vector<2x8x32xf32>
    %33 = tpu.matmul %32, %1, %cst_14 {dimension_numbers = #tpu.dot_dimension_numbers<[2], [1], [1], [2], [0, 0, 0, 1, 1, 2], [0], [0]>} : vector<2x8x8xf32>, vector<2x8x32xf32>, vector<2x8x32xf32> -> vector<2x8x32xf32>
    "tpu.trace_stop"() : () -> ()
    %34 = vector.shape_cast %33 : vector<2x8x32xf32> to vector<2x256xf32>
    %c0_15 = arith.constant 0 : index
    %c0_16 = arith.constant 0 : index
    %35 = vector.load %arg6[%c0_15, %c0_16] : memref<2x256xf32, #tpu.memory_space<vmem>>, vector<2x256xf32>
    tpu.vector_store %arg6[%c0_15, %c0_16], %34 {strides = array<i32>} : memref<2x256xf32, #tpu.memory_space<vmem>>, vector<2x256xf32>,
    return
  }
  func.func @transform_0(%arg0: i32) -> (i32, i32) {
    %c0_i32 = arith.constant 0 : i32
    %c0_i32_0 = arith.constant 0 : i32
    return %arg0, %c0_i32 : i32, i32
  }
  func.func @transform_1(%arg0: i32) -> (i32, i32) {
    %c0_i32 = arith.constant 0 : i32
    %c0_i32_0 = arith.constant 0 : i32
    %c0_i32_1 = arith.constant 0 : i32
    return %c0_i32, %c0_i32_0 : i32, i32
  }
  func.func @transform_2(%arg0: i32) -> (i32, i32) {
    %c0_i32 = arith.constant 0 : i32
    %c0_i32_0 = arith.constant 0 : i32
    %c0_i32_1 = arith.constant 0 : i32
    return %c0_i32, %c0_i32_0 : i32, i32
  }
  func.func @transform_3(%arg0: i32) -> (i32, i32) {
    %c0_i32 = arith.constant 0 : i32
    %c0_i32_0 = arith.constant 0 : i32
    %c0_i32_1 = arith.constant 0 : i32
    return %c0_i32, %c0_i32_0 : i32, i32
  }
  func.func @transform_4(%arg0: i32) -> (i32, i32) {
    %c0_i32 = arith.constant 0 : i32
    %c0_i32_0 = arith.constant 0 : i32
    %c0_i32_1 = arith.constant 0 : i32
    return %c0_i32, %c0_i32_0 : i32, i32
  }
  func.func @transform_5(%arg0: i32) -> (i32, i32) {
    %c0_i32 = arith.constant 0 : i32
    %c0_i32_0 = arith.constant 0 : i32
    return %arg0, %c0_i32 : i32, i32
  }
}

module attributes {stable_mosaic.version = 11 : i64} {
  func.func @_kernel_3d(%arg0: i32, %arg1: memref<2x8x32xf32, #tpu.memory_space<vmem>>, %arg2: memref<32x16xf32, #tpu.memory_space<vmem>>, %arg3: memref<32x16xf32, #tpu.memory_space<vmem>>, %arg4: memref<1x16xf32, #tpu.memory_space<vmem>>, %arg5: memref<1x16xf32, #tpu.memory_space<vmem>>, %arg6: memref<2x8x32xf32, #tpu.memory_space<vmem>>) attributes {dimension_semantics = [#tpu.dimension_semantics<parallel>], iteration_bounds = array<i64: 1>, scalar_prefetch = 0 : i64, scratch_operands = 0 : i64, tpu.core_type = #tpu.core_type<tc>, window_params = [{transform_indices = @transform_0, window_bounds = array<i64: 2, 8, 32>}, {pipeline_mode = #tpu.pipeline_mode<synchronous>, transform_indices = @transform_1, window_bounds = array<i64: 32, 16>}, {pipeline_mode = #tpu.pipeline_mode<synchronous>, transform_indices = @transform_2, window_bounds = array<i64: 32, 16>}, {pipeline_mode = #tpu.pipeline_mode<synchronous>, transform_indices = @transform_3, window_bounds = array<i64: 1, 16>}, {pipeline_mode = #tpu.pipeline_mode<synchronous>, transform_indices = @transform_4, window_bounds = array<i64: 1, 16>}, {transform_indices = @transform_5, window_bounds = array<i64: 2, 8, 32>}]} {
    %c0 = arith.constant 0 : index
    %c0_0 = arith.constant 0 : index
    %c0_1 = arith.constant 0 : index
    %0 = vector.load %arg1[%c0, %c0_0, %c0_1] : memref<2x8x32xf32, #tpu.memory_space<vmem>>, vector<2x8x32xf32>
    %c0_2 = arith.constant 0 : index
    %c0_3 = arith.constant 0 : index
    %1 = vector.load %arg2[%c0_2, %c0_3] : memref<32x16xf32, #tpu.memory_space<vmem>>, vector<32x16xf32>
    %c0_4 = arith.constant 0 : index
    %c0_5 = arith.constant 0 : index
    %2 = vector.load %arg3[%c0_4, %c0_5] : memref<32x16xf32, #tpu.memory_space<vmem>>, vector<32x16xf32>
    %c0_6 = arith.constant 0 : index
    %c0_7 = arith.constant 0 : index
    %3 = vector.load %arg4[%c0_6, %c0_7] : memref<1x16xf32, #tpu.memory_space<vmem>>, vector<1x16xf32>
    %c0_8 = arith.constant 0 : index
    %c0_9 = arith.constant 0 : index
    %4 = vector.load %arg5[%c0_8, %c0_9] : memref<1x16xf32, #tpu.memory_space<vmem>>, vector<1x16xf32>
    %5 = vector.shape_cast %0 : vector<2x8x32xf32> to vector<16x32xf32>
    %cst = arith.constant dense<0.000000e+00> : vector<16x16xf32>
    %6 = tpu.matmul %5, %1, %cst {dimension_numbers = #tpu.dot_dimension_numbers<[1], [0], [0], [1], [0, 0, 1, 1], [], []>} : vector<16x32xf32>, vector<32x16xf32>, vector<16x16xf32> -> vector<16x16xf32>
    %7 = vector.broadcast %3 : vector<1x16xf32> to vector<16x16xf32>
    %8 = arith.addf %6, %7 : vector<16x16xf32>
    %cst_10 = arith.constant dense<0.000000e+00> : vector<16x16xf32>
    %9 = tpu.matmul %5, %2, %cst_10 {dimension_numbers = #tpu.dot_dimension_numbers<[1], [0], [0], [1], [0, 0, 1, 1], [], []>} : vector<16x32xf32>, vector<32x16xf32>, vector<16x16xf32> -> vector<16x16xf32>
    %10 = vector.broadcast %4 : vector<1x16xf32> to vector<16x16xf32>
    %11 = arith.addf %9, %10 : vector<16x16xf32>
    %12 = vector.shape_cast %8 : vector<16x16xf32> to vector<2x8x16xf32>
    %13 = vector.shape_cast %11 : vector<16x16xf32> to vector<2x8x16xf32>
    "tpu.trace_start"() <{level = 10 : i32, message = "bqe,bke->bqk"}> : () -> ()
    %cst_11 = arith.constant dense<0.000000e+00> : vector<2x8x8xf32>
    %14 = tpu.matmul %12, %13, %cst_11 {dimension_numbers = #tpu.dot_dimension_numbers<[2], [2], [1], [1], [0, 0, 0, 1, 1, 1], [0], [0]>} : vector<2x8x16xf32>, vector<2x8x16xf32>, vector<2x8x8xf32> -> vector<2x8x8xf32>
    "tpu.trace_stop"() : () -> ()
    %15 = tpu.iota {dimensions = array<i32: 0>} : vector<8x8xi32>
    %16 = tpu.iota {dimensions = array<i32: 1>} : vector<8x8xi32>
    %17 = arith.cmpi sge, %15, %16 : vector<8x8xi32>
    %18 = vector.shape_cast %17 : vector<8x8xi1> to vector<1x8x8xi1>
    %cst_12 = arith.constant -1.000000e+04 : f32
    %19 = vector.shape_cast %18 : vector<1x8x8xi1> to vector<1x8x8xi1>
    %20 = vector.broadcast %19 : vector<1x8x8xi1> to vector<2x8x8xi1>
    %21 = vector.broadcast %cst_12 : f32 to vector<2x8x8xf32>
    %22 = arith.select %20, %14, %21 : vector<2x8x8xi1>, vector<2x8x8xf32>
    %cst_13 = arith.constant dense<0xFF800000> : vector<2x8xf32>
    %23 = vector.multi_reduction <maximumf>, %22, %cst_13 [2] : vector<2x8x8xf32> to vector<2x8xf32>
    %24 = vector.shape_cast %23 : vector<2x8xf32> to vector<2x8x1xf32>
    %25 = vector.broadcast %24 : vector<2x8x1xf32> to vector<2x8x8xf32>
    %26 = arith.subf %22, %25 : vector<2x8x8xf32>
    %27 = math.exp %26 : vector<2x8x8xf32>
    %cst_14 = arith.constant dense<0.000000e+00> : vector<2x8xf32>
    %28 = vector.multi_reduction <add>, %27, %cst_14 [2] : vector<2x8x8xf32> to vector<2x8xf32>
    %29 = vector.shape_cast %28 : vector<2x8xf32> to vector<2x8x1xf32>
    %30 = vector.broadcast %29 : vector<2x8x1xf32> to vector<2x8x8xf32>
    %31 = arith.divf %27, %30 : vector<2x8x8xf32>
    "tpu.trace_start"() <{level = 10 : i32, message = "bqk,bkd->bqd"}> : () -> ()
    %cst_15 = arith.constant dense<0.000000e+00> : vector<2x8x32xf32>
    %32 = tpu.matmul %31, %0, %cst_15 {dimension_numbers = #tpu.dot_dimension_numbers<[2], [1], [1], [2], [0, 0, 0, 1, 1, 2], [0], [0]>} : vector<2x8x8xf32>, vector<2x8x32xf32>, vector<2x8x32xf32> -> vector<2x8x32xf32>
    "tpu.trace_stop"() : () -> ()
    %c0_16 = arith.constant 0 : index
    %c0_17 = arith.constant 0 : index
    %c0_18 = arith.constant 0 : index
    %33 = vector.load %arg6[%c0_16, %c0_17, %c0_18] : memref<2x8x32xf32, #tpu.memory_space<vmem>>, vector<2x8x32xf32>
    tpu.vector_store %arg6[%c0_16, %c0_17, %c0_18], %32 {strides = array<i32>} : memref<2x8x32xf32, #tpu.memory_space<vmem>>, vector<2x8x32xf32>,
    return
  }
  func.func @transform_0(%arg0: i32) -> (i32, i32, i32) {
    %c0_i32 = arith.constant 0 : i32
    %c0_i32_0 = arith.constant 0 : i32
    %c0_i32_1 = arith.constant 0 : i32
    return %arg0, %c0_i32, %c0_i32_0 : i32, i32, i32
  }
  func.func @transform_1(%arg0: i32) -> (i32, i32) {
    %c0_i32 = arith.constant 0 : i32
    %c0_i32_0 = arith.constant 0 : i32
    %c0_i32_1 = arith.constant 0 : i32
    return %c0_i32, %c0_i32_0 : i32, i32
  }
  func.func @transform_2(%arg0: i32) -> (i32, i32) {
    %c0_i32 = arith.constant 0 : i32
    %c0_i32_0 = arith.constant 0 : i32
    %c0_i32_1 = arith.constant 0 : i32
    return %c0_i32, %c0_i32_0 : i32, i32
  }
  func.func @transform_3(%arg0: i32) -> (i32, i32) {
    %c0_i32 = arith.constant 0 : i32
    %c0_i32_0 = arith.constant 0 : i32
    %c0_i32_1 = arith.constant 0 : i32
    return %c0_i32, %c0_i32_0 : i32, i32
  }
  func.func @transform_4(%arg0: i32) -> (i32, i32) {
    %c0_i32 = arith.constant 0 : i32
    %c0_i32_0 = arith.constant 0 : i32
    %c0_i32_1 = arith.constant 0 : i32
    return %c0_i32, %c0_i32_0 : i32, i32
  }
  func.func @transform_5(%arg0: i32) -> (i32, i32, i32) {
    %c0_i32 = arith.constant 0 : i32
    %c0_i32_0 = arith.constant 0 : i32
    %c0_i32_1 = arith.constant 0 : i32
    return %arg0, %c0_i32, %c0_i32_0 : i32, i32, i32
  }
}

</mosaic_0001>

<bundles_post_ra>
// kernel: tpu_custom_call.1
= control target key start
LH: loop header
LB: loop body
LE: loop exit
PB: predicated region body
PF: predicated region fallthrough
CT: control target
= control target key end

     0   :  { %vm39_vm0 = vcmask 261120   ;;  %s777_s0 = inlined_call_operand.vmem [shape: f32[2,8,32], index: 0, kind: input, shape index: {}]   ;;  %s778_s1 = inlined_call_operand.vmem [shape: f32[32,16], index: 1, kind: input, shape index: {}]   ;;  %s779_s2 = inlined_call_operand.vmem [shape: f32[32,16], index: 2, kind: input, shape index: {}]   ;;  %s780_s3 = inlined_call_operand.vmem [shape: f32[1,16], index: 3, kind: input, shape index: {}]   ;;  %s781_s4 = inlined_call_operand.vmem [shape: f32[1,16], index: 4, kind: input, shape index: {}]   ;;  %s782_s5 = inlined_call_operand.hbm [shape: f32[2,8,32], index: 5, kind: output, shape index: {}]  }
   0x1   :  { %v27_v0 = vld [vmem:[%s779_s2] sm:$0xff]  ;;  %v28_v1 = vld [vmem:[%s779_s2 + $0x8] sm:$0xff]  ;;  %v29_v5 = vld [vmem:[%s779_s2 + $0x10] sm:$0xff] }
   0x2   :  { %v23_v2 = vld [vmem:[%s778_s1] sm:$0xff]  ;;  %v633_v3 = vpack.c.bf16 %v28_v1, %v27_v0  ;;  %v24_v4 = vld [vmem:[%s778_s1 + $0x8] sm:$0xff]  ;;  %v30_v6 = vld [vmem:[%s779_s2 + $0x18] sm:$0xff] }
   0x3   :  { %v625_v7 = vpack.c.bf16 %v24_v4, %v23_v2  ;;  %v637_v8 = vpack.c.bf16 %v30_v6, %v29_v5  ;;  %v25_v9 = vld [vmem:[%s778_s1 + $0x10] sm:$0xff]  ;;  %v26_v10 = vld [vmem:[%s778_s1 + $0x18] sm:$0xff]  ;;  %v21_v11 = vld [vmem:[%s777_s0] sm:$0xff] }
   0x4   :  { %634 = vmatprep.subr.bf16.mxu1 %v633_v3  ;;  %v629_v12 = vpack.c.bf16 %v26_v10, %v25_v9  ;;  %602 = vmatprep.mubr.msk.f32.mxu1 %vm39_vm0, %v21_v11 }
   0x5   :  { %10 = vsyncpa [#allocation3], 0  ;;  %636 = vmatpush3.bf16.msra.mxu1 %v633_v3  ;;  %626 = vmatprep.subr.bf16.mxu0 %v625_v7  ;;  %v22_v13 = vld [vmem:[%s777_s0 + $0x8] sm:$0xff]  ;;  %v678_v14 = vmov 0.0   ;;  %vm679_vm1 = vmmov 0   ;;  %vm202_vm2 = vcmask 130048   ;;  %v355_v25 = vlaneseq }
   0x6   :  { %628 = vmatpush3.bf16.msra.mxu0 %v625_v7  ;;  %638 = vmatprep.subr.bf16.mxu1 %v637_v8  ;;  %v554_v15 = vld [vmem:[%s781_s4] ss:$0 sm:$0xff]  ;;  %vm364_vm4 = vcmask 64512   ;;  %s680_s0 = smov [#allocation2]  }
   0x7   :  { %630 = vmatprep.subr.bf16.mxu0 %v629_v12  ;;  %591 = vmatprep.mubr.msk.f32.mxu0 %vm39_vm0, %v21_v11  ;;  %v551_v16 = vld [vmem:[%s780_s3] ss:$0 sm:$0xff]  ;;  %v356_v26 = vshrl.u32 %v355_v25, 7  ;;  %v358_v27 = vand.u32 127, %v355_v25  ;;  %s540_s3 = sshll.u32 %s680_s0, 4  ;;  %s541_s3 = int_to_ptr.vmem [resolvable:$true] %s540_s3 }
   0x8   :  { %s654_s4 = scalar_lea.vmem %s541_s3, 256  ;;  %p659_p1 = scmp.lt.s32.totalorder %s541_s3, %s541_s3 }
   0x9   :  { %640 = vmatpush3.bf16.msra.mxu1 %v637_v8  ;;  %vm359_vm3 = vcmp.ge.s32.totalorder %v356_v26, %v358_v27  ;;  %p655_p0 = scmp.ne.s32.totalorder %s541_s3, %s654_s4  ;;  %p660_p2 = scmp.lt.s32.totalorder %s654_s4, %s654_s4 }
   0xa   :  { %632 = vmatpush3.bf16.msra.mxu0 %v629_v12  ;;  %610 = vmatprep.subr.mxu1 %v678_v14 }
   0xb   :  { %605 = vmatprep.subr.mxu0 %v678_v14  ;;  %p661_p3 = por %p660_p2, %p659_p1 }
   0xc   :  { %603 = vmatmul.mubr.msk.f32.vlgmr.msra.gmra.mrb[0].mxu1 %vm39_vm0, %v22_v13 }
   0xd   :  { %592 = vmatmul.mubr.msk.f32.vlgmr.msra.gmra.mrb[0].mxu0 %vm39_vm0, %v22_v13  ;;  %612 = vmatprep.mubr.msk.f32.mxu1 %vm679_vm1, %v678_v14  ;;  %p662_p4 = pnand %p661_p3, %p655_p0 }
   0xe   :  { %607 = vmatprep.mubr.msk.f32.mxu0 %vm679_vm1, %v678_v14 }
  0xdf   :  { %v604_v17 = vpop.f32.mrb[0].mxu1 }
  0xe0   :  { %v199_v18 = vadd.f32 %v604_v17, %v554_v15  ;;  %v193_v19 = vpop.f32.mrb[1].mxu1  ;;  %v593_v20 = vpop.f32.mrb[0].mxu0 }
  0xe1   :  { %v194_v21 = vadd.f32 %v554_v15, %v193_v19  ;;  %v118_v22 = vadd.f32 %v593_v20, %v551_v16  ;;  %v112_v23 = vpop.f32.mrb[1].mxu0 }
  0xe2   :  { %611 = vmatpush3.xpose.msk.msra.mxu1 %vm202_vm2, %v199_v18  ;;  %v113_v24 = vadd.f32 %v551_v16, %v112_v23 }
  0xe3   :  { %606 = vmatpush3.xpose.msk.msra.mxu0 %vm202_vm2, %v194_v21  ;;  %620 = vmatprep.subr.mxu1 %v678_v14 }
  0xe4   :  { %615 = vmatprep.subr.mxu0 %v678_v14 }
  0xe5   :  { %613 = vmatmul.mubr.msk.f32.vlgmr.msra.gmra.mrb[2].mxu1 %vm202_vm2, %v118_v22 }
  0xe6   :  { %608 = vmatmul.mubr.msk.f32.vlgmr.msra.gmra.mrb[2].mxu0 %vm202_vm2, %v113_v24  ;;  %621 = vmatpush3.msra.mxu1 %v22_v13 }
  0xe7   :  { %616 = vmatpush3.msra.mxu0 %v21_v11  ;;  %617 = vmatprep.mubr.msk.f32.mxu0 %vm679_vm1, %v678_v14 }
  0xe8   :  { %622 = vmatprep.mubr.msk.f32.mxu1 %vm679_vm1, %v678_v14 }
 0x1b8   :  { %v351_v28 = vpop.f32.mrb[2].mxu1 }
 0x1b9   :  { %v275_v29 = vpop.f32.mrb[2].mxu0  ;;  %v614_v30 = vpop.f32.mrb[3].mxu1  ;;  %v363_v34 = vsel %vm359_vm3, %v351_v28, -10000.0 }
 0x1ba   :  { %v362_v31 = vsel %vm359_vm3, %v275_v29, -10000.0  ;;  %v609_v32 = vpop.f32.mrb[3].mxu0  ;;  %v368_v35 = vsel %vm364_vm4, %v363_v34, -inf }
 0x1bb   :  { %v365_v33 = vsel %vm364_vm4, %v362_v31, -inf }
 0x1bc   :  { %366 = vmax.xlane.f32.xlu0 %v365_v33 }
 0x1c0   :  { %369 = vmax.xlane.f32.xlu0 %v368_v35 }
 0x249   :  { %v367_v36 = vpop.xlane.xlu0 %366 }
 0x24a   :  { %v371_v37 = vsub.f32 %v362_v31, %v367_v36 }
 0x24c   :  { %v373_v38 = vmul.f32 1.442695, %v371_v37 }
 0x24d   :  { %v370_v39 = vpop.xlane.xlu0 %369 }
 0x24e   :  { %646 = vpow2.f32 %v373_v38  ;;  %v372_v40 = vsub.f32 %v363_v34, %v370_v39 }
 0x250   :  { %v375_v41 = vmul.f32 1.442695, %v372_v40 }
 0x252   :  { %648 = vpow2.f32 %v375_v41 }
 0x258   :  { %v647_v42 = vpop.eup %646 }
 0x259   :  { %v377_v43 = vsel %vm364_vm4, %v647_v42, 0.0 }
 0x25a   :  { %378 = vadd.xlane.f32.xlu1 %v377_v43 }
 0x25c   :  { %v649_v44 = vpop.eup %648 }
 0x25d   :  { %v380_v45 = vsel %vm364_vm4, %v649_v44, 0.0 }
 0x25e   :  { %381 = vadd.xlane.f32.xlu1 %v380_v45 }
 0x2e7   :  { %v379_v46 = vpop.xlane.xlu1 %378 }
 0x2e8   :  { %650 = vrcp.f32 %v379_v46 }
 0x2eb   :  { %v382_v47 = vpop.xlane.xlu1 %381 }
 0x2ec   :  { %652 = vrcp.f32 %v382_v47 }
 0x2f2   :  { %v651_v48 = vpop.eup %650 }
 0x2f3   :  { %v384_v49 = vmul.f32 %v651_v48, %v647_v42 }
 0x2f5   :  { %618 = vmatmul.mubr.msk.f32.vlgmr.msra.gmra.mrb[4].mxu0 %vm364_vm4, %v384_v49 }
 0x2f6   :  { %v653_v50 = vpop.eup %652 }
 0x2f7   :  { %v386_v51 = vmul.f32 %v653_v50, %v649_v44 }
 0x2f9   :  { %623 = vmatmul.mubr.msk.f32.vlgmr.msra.gmra.mrb[4].mxu1 %vm364_vm4, %v386_v51 }
 0x3c8   :  { %v456_v52 = vpop.f32.mrb[4].mxu0 }
 0x3c9   :  { %533 = vst.msk [vmem:[#allocation2] sm:$0xff] %vm39_vm0, %v456_v52  ;;  %v619_v53 = vpop.f32.mrb[5].mxu0 }
 0x3cc   :  { %v529_v54 = vpop.f32.mrb[4].mxu1 }
 0x3cd   :  { %534 = vst.msk [vmem:[#allocation2 + $0x8] sm:$0xff] %vm39_vm0, %v529_v54  ;;  %v624_v55 = vpop.f32.mrb[5].mxu1 }
 0x3ce   :  { %665 = shalt.err (!%p662_p4)
}
 0x3cf   :  { %s666_s17 = scalar_lea.hbm %s782_s5, 256 }
 0x3d0   :  { %p667_p5 = scmp.ne.s32.totalorder %s782_s5, %s666_s17  ;;  %p670_p6 = scmp.lt.u32.totalorder %s666_s17, %s782_s5 }
 0x3d2   :  { %p672_p7 = pnand %p670_p6, %p667_p5 }
 0x3d4   :  { %675 = shalt.err (!%p672_p7)
}
 0x3d5   :  { %s681_s22 = smov 128   ;;  %s682_s23 = smov 8  }
 0x3d6   :  { %546 = dma.vmem_to_hbm [thread:$0]  %s541_s3, 256, %s782_s5, [#allocation3], %s681_s22, %s681_s22, %s682_s23  }
 0x3d7   :  { %676 = dma.done.wait [#allocation3], 256  }
 0x3d8   :  { %677 = vsyncadd [#allocation3], 4294967040 }
 0x3d9   :  { %550 = vsyncpa [#allocation3], 1 }

</bundles_post_ra>
